<compile_context>
chip_gen: v6e
topology: v6e:2x2x1
jax: 0.10.0
libtpu: 0.0.40
codegen_flags: <defaults>
</compile_context>

<pallas_src>
import functools
import math

import jax
import jax.numpy as jnp
from jax import lax
from jax.experimental import pallas as pl
from jax.experimental.pallas import tpu as pltpu


def _round_up(x, m):
    return (x + m - 1) // m * m


def _logit(t):
    """sigmoid(x) > t  <=>  x > logit(t) (with saturation guards)."""
    if t <= 0.0:
        return float("-inf")
    if t >= 1.0:
        return float("inf")
    return math.log(t) - math.log1p(-t)


def _log_or_neginf(t):
    """exp(x) > t  <=>  x > log(t) for t > 0; always true for t <= 0."""
    if t <= 0.0:
        return float("-inf")
    return math.log(t)


def _pr_counts_kernel(labels_ref, stat_ref, out_ref, acc_ref, *,
                      thresholds, ignore_idx, rp8):
    """Accumulates [tp_k..., fp_k..., sum(w*trues), sum(w*falses)] over lane blocks.

    labels_ref : (8, T) int32      flattened labels (row-major (8, R/8) view)
    stat_ref   : (8, T) float32    per-element logit statistic
    out_ref    : (1, 2K+2, 1) f32  per-core partial sums (written at last step)
    acc_ref    : (2K+2, 8, T) f32  VMEM accumulator, persists across the grid
    """
    c = pl.program_id(0)            # core split (parallel)
    i = pl.program_id(1)            # lane-block index within this split (reduction)
    n_inner = pl.num_programs(1)
    K = len(thresholds)
    T = labels_ref.shape[1]

    @pl.when(i == 0)
    def _():
        acc_ref[...] = jnp.zeros_like(acc_ref)

    labels = labels_ref[...]                       # (8, T) int32
    stat = stat_ref[...]                           # (8, T) float32

    # Global lane-column index; masks both the ragged last block and any
    # duplicated (clamped) block of an uneven core split.
    col = (c * n_inner + i) * T + lax.broadcasted_iota(jnp.int32, labels.shape, 1)
    valid = col < rp8

    # weights = (labels != ignore_idx)  (weights=None path of forward)
    w = valid & (labels != ignore_idx)
    wt = (w & (labels > 0)).astype(jnp.float32)    # weighted positives
    wf = (w & (labels == 0)).astype(jnp.float32)   # weighted negatives

    # Threshold-independent totals (give fn/tn in the wrapper for free).
    acc_ref[2 * K, :, :] += wt
    acc_ref[2 * K + 1, :, :] += wf

    for k, t in enumerate(thresholds):             # static, unrolled
        pred_true = stat > t                       # single VPU compare / element
        acc_ref[k, :, :] += jnp.where(pred_true, wt, 0.0)       # tp_k partials
        acc_ref[K + k, :, :] += jnp.where(pred_true, wf, 0.0)   # fp_k partials

    @pl.when(i == n_inner - 1)
    def _():
        red = jnp.sum(acc_ref[...], axis=2)                        # (2K+2, 8)
        out_ref[...] = jnp.sum(red, axis=1, keepdims=True)[None]   # (1, 2K+2, 1)


def precision_recall_metrics(labels, preds, *, thresholds=(0.5,), ignore_idx=-1,
                             use_sigmoid_score=True, encode_background_as_zeros=True,
                             tile_lanes=8192):
    """Returns (tp, tn, fp, fn), each shape (len(thresholds),), as f32 sums."""
    thresholds = tuple(float(t) for t in thresholds)
    K = len(thresholds)
    C = preds.shape[-1]
    R = math.prod(labels.shape)
    assert math.prod(preds.shape[:-1]) == R

    preds2d = preds.reshape(R, C)                  # free row-major reshape (no transpose!)
    labels_flat = labels.reshape(R).astype(jnp.int32)

    # ---- per-element logit statistic (one fused XLA pass over preds) ----
    if encode_background_as_zeros:
        assert use_sigmoid_score is True
        stat = jnp.max(preds2d, axis=-1)
        thr = tuple(_logit(t) for t in thresholds)
    elif use_sigmoid_score:
        stat = jnp.max(preds2d[:, 1:], axis=-1)
        thr = tuple(_logit(t) for t in thresholds)
    else:
        m = jnp.max(preds2d, axis=-1)
        lse = m + jnp.log(jnp.sum(jnp.exp(preds2d - m[:, None]), axis=-1))
        stat = jnp.max(preds2d[:, 1:], axis=-1) - lse
        thr = tuple(_log_or_neginf(t) for t in thresholds)
    stat = stat.astype(jnp.float32)

    # ---- dense (8, R/8) presentation; pad (<= 7 elems) only if R % 8 != 0 ----
    rp = _round_up(R, 8)
    if rp != R:
        labels_flat = jnp.pad(labels_flat, (0, rp - R), constant_values=ignore_idx)
        stat = jnp.pad(stat, (0, rp - R))
    rp8 = rp // 8
    labels2d = labels_flat.reshape(8, rp8)
    stat2d = stat.reshape(8, rp8)

    RWS = 2 * K + 2

    # ---- lane-tile selection, capped by a VMEM budget ----
    per_lane_bytes = 128 + 32 * RWS                # double-buffered inputs + acc rows
    t_cap = max(128, ((20 * 1024 * 1024) // per_lane_bytes) // 128 * 128)
    t_req = max(128, min(int(tile_lanes), t_cap))
    if rp8 <= t_req:
        T = rp8                                    # single full-extent block
    else:
        T = (t_req // 128) * 128                   # (8,128)-aligned block
    n_blocks = pl.cdiv(rp8, T)

    # Dual-TensorCore split (v7x); sequential (and still correct) on v5e/v6e.
    n_split = 2 if n_blocks >= 2 else 1
    n_inner = pl.cdiv(n_blocks, n_split)
    last_block = n_blocks - 1

    def in_map(c, i):
        # Clamp so an uneven split never DMAs a fully out-of-bounds block; the
        # in-kernel `col < rp8` mask zeroes any duplicated block's contribution.
        return (0, jnp.minimum(c * n_inner + i, last_block))

    block_in_bytes = 8 * T * (4 + 4)
    acc_bytes = RWS * 8 * T * 4
    vmem_limit = int(min(64 * 1024 * 1024,
                         max(16 * 1024 * 1024,
                             2 * block_in_bytes + acc_bytes + (4 << 20))))

    kernel = functools.partial(
        _pr_counts_kernel, thresholds=thr, ignore_idx=int(ignore_idx), rp8=rp8)

    out = pl.pallas_call(
        kernel,
        out_shape=jax.ShapeDtypeStruct((n_split, RWS, 1), jnp.float32),
        grid_spec=pltpu.PrefetchScalarGridSpec(
            num_scalar_prefetch=0,
            grid=(n_split, n_inner),
            in_specs=[
                pl.BlockSpec((8, T), in_map),      # labels
                pl.BlockSpec((8, T), in_map),      # stat
            ],
            out_specs=pl.BlockSpec((1, RWS, 1), lambda c, i: (c, 0, 0)),
            scratch_shapes=[pltpu.VMEM((RWS, 8, T), jnp.float32)],
        ),
        compiler_params=pltpu.CompilerParams(
            dimension_semantics=("parallel", "arbitrary"),
            vmem_limit_bytes=vmem_limit),
    )(labels2d, stat2d)

    sums = jnp.sum(out, axis=0)[:, 0]              # (2K+2,)
    tp = sums[:K]
    fp = sums[K:2 * K]
    wt_tot = sums[2 * K]                           # sum(w * trues)   (threshold-free)
    wf_tot = sums[2 * K + 1]                       # sum(w * falses)
    fn = wt_tot - tp                               # exact for integer counts < 2^24
    tn = wf_tot - fp
    return tp, tn, fp, fn


def precision_recall_forward(labels, preds, *, thresholds=(0.5,), ignore_idx=-1,
                             use_sigmoid_score=True, encode_background_as_zeros=True,
                             state=None, tile_lanes=8192):
    """Functional equivalent of PrecisionRecall.forward (weights=None path).

    Returns ((precision, recall), new_state); `state` holds the four running
    buffers (prec_total, prec_count, rec_total, rec_count), each shape (K,).
    """
    K = len(thresholds)
    if state is None:
        z = jnp.zeros((K,), jnp.float32)
        state = dict(prec_total=z, prec_count=z, rec_total=z, rec_count=z)

    tp, tn, fp, fn = precision_recall_metrics(
        labels, preds, thresholds=thresholds, ignore_idx=ignore_idx,
        use_sigmoid_score=use_sigmoid_score,
        encode_background_as_zeros=encode_background_as_zeros,
        tile_lanes=tile_lanes)

    rec_count = tp + fn
    prec_count = tp + fp
    new_state = dict(
        rec_count=state["rec_count"] + jnp.where(rec_count > 0, rec_count, 0.0),
        rec_total=state["rec_total"] + jnp.where(rec_count > 0, tp, 0.0),
        prec_count=state["prec_count"] + jnp.where(prec_count > 0, prec_count, 0.0),
        prec_total=state["prec_total"] + jnp.where(prec_count > 0, tp, 0.0),
    )
    prec = new_state["prec_total"] / jnp.maximum(new_state["prec_count"], 1.0)
    rec = new_state["rec_total"] / jnp.maximum(new_state["rec_count"], 1.0)
    return (prec, rec), new_state


# ---------------- pure-JAX reference (mirrors the torch forward) ----------------
def reference_forward(labels, preds, thresholds=(0.5,), ignore_idx=-1,
                      use_sigmoid_score=True, encode_background_as_zeros=True,
                      state=None):
    if encode_background_as_zeros:
        assert use_sigmoid_score is True
        total_scores = jax.nn.sigmoid(preds)
    elif use_sigmoid_score:
        total_scores = jax.nn.sigmoid(preds)[..., 1:]
    else:
        total_scores = jax.nn.softmax(preds, axis=-1)[..., 1:]
    scores = jnp.max(total_scores, axis=-1)
    weights = (labels != ignore_idx).astype(jnp.float32)

    K = len(thresholds)
    if state is None:
        z = jnp.zeros((K,), jnp.float32)
        state = dict(prec_total=z, prec_count=z, rec_total=z, rec_count=z)

    lab = labels.reshape(-1)
    sc = scores.reshape(-1)
    w = weights.reshape(-1)
    new_pt, new_pc, new_rt, new_rc = [], [], [], []
    for i, th in enumerate(thresholds):
        pred_true = sc > th
        trues = lab > 0
        falses = lab == 0
        tp = jnp.sum(w * (trues & pred_true).astype(jnp.float32))
        fp = jnp.sum(w * (falses & pred_true).astype(jnp.float32))
        fn = jnp.sum(w * (trues & ~pred_true).astype(jnp.float32))
        rc = tp + fn
        pc = tp + fp
        new_rc.append(state["rec_count"][i] + jnp.where(rc > 0, rc, 0.0))
        new_rt.append(state["rec_total"][i] + jnp.where(rc > 0, tp, 0.0))
        new_pc.append(state["prec_count"][i] + jnp.where(pc > 0, pc, 0.0))
        new_pt.append(state["prec_total"][i] + jnp.where(pc > 0, tp, 0.0))
    new_state = dict(prec_total=jnp.stack(new_pt), prec_count=jnp.stack(new_pc),
                     rec_total=jnp.stack(new_rt), rec_count=jnp.stack(new_rc))
    prec = new_state["prec_total"] / jnp.maximum(new_state["prec_count"], 1.0)
    rec = new_state["rec_total"] / jnp.maximum(new_state["rec_count"], 1.0)
    return (prec, rec), new_state


if __name__ == "__main__":
    key = jax.random.PRNGKey(0)
    k1, k2, k3, k4 = jax.random.split(key, 4)

    # ---- Config A: sigmoid / encode_background_as_zeros path, K=3 thresholds.
    # tile_lanes=128 deliberately forces a multi-block grid, the 2-way core
    # split and the ragged lane tail (R=2000 -> (8, 250), blocks 128 + 122).
    batch, anchors, num_classes = 2, 1000, 4
    labels_a = jax.random.randint(k1, (batch, anchors), -1, 3, dtype=jnp.int32)
    preds_a = jax.random.normal(k2, (batch, anchors, num_classes), jnp.float32)
    thr_a = (0.3, 0.5, 0.7)

    (prec_a, rec_a), state_a = precision_recall_forward(
        labels_a, preds_a, thresholds=thr_a, ignore_idx=-1,
        use_sigmoid_score=True, encode_background_as_zeros=True, tile_lanes=128)
    prec_a = jax.block_until_ready(prec_a)
    rec_a = jax.block_until_ready(rec_a)

    (prec_ar, rec_ar), state_ar = reference_forward(
        labels_a, preds_a, thresholds=thr_a, ignore_idx=-1,
        use_sigmoid_score=True, encode_background_as_zeros=True)
    for name in ("prec_total", "prec_count", "rec_total", "rec_count"):
        assert jnp.allclose(state_a[name], state_ar[name], atol=1e-3), (
            name, state_a[name], state_ar[name])
    assert jnp.allclose(prec_a, prec_ar, rtol=1e-5, atol=1e-6), (prec_a, prec_ar)
    assert jnp.allclose(rec_a, rec_ar, rtol=1e-5, atol=1e-6), (rec_a, rec_ar)

    # ---- Config B: softmax path, R=999 (not a multiple of 8 -> pad path).
    labels_b = jax.random.randint(k3, (3, 333), -1, 4, dtype=jnp.int32)
    preds_b = jax.random.normal(k4, (3, 333, 5), jnp.float32)
    thr_b = (0.25, 0.5)

    (prec_b, rec_b), state_b = precision_recall_forward(
        labels_b, preds_b, thresholds=thr_b, ignore_idx=-1,
        use_sigmoid_score=False, encode_background_as_zeros=False,
        tile_lanes=8192)
    prec_b = jax.block_until_ready(prec_b)
    rec_b = jax.block_until_ready(rec_b)

    (prec_br, rec_br), state_br = reference_forward(
        labels_b, preds_b, thresholds=thr_b, ignore_idx=-1,
        use_sigmoid_score=False, encode_background_as_zeros=False)
    for name in ("prec_total", "prec_count", "rec_total", "rec_count"):
        assert jnp.allclose(state_b[name], state_br[name], atol=1e-3), (
            name, state_b[name], state_br[name])
    assert jnp.allclose(prec_b, prec_br, rtol=1e-5, atol=1e-6), (prec_b, prec_br)
    assert jnp.allclose(rec_b, rec_br, rtol=1e-5, atol=1e-6), (rec_b, rec_br)

    print("KERNEL_OK")
</pallas_src>

<mosaic_0001>
module attributes {stable_mosaic.version = 11 : i64} {
  func.func @_pr_counts_kernel(%arg0: i32, %arg1: i32, %arg2: memref<8x128xi32, #tpu.memory_space<vmem>>, %arg3: memref<8x128xf32, #tpu.memory_space<vmem>>, %arg4: memref<1x8x1xf32, #tpu.memory_space<vmem>>, %arg5: memref<8x8x128xf32, #tpu.memory_space<vmem>>) attributes {dimension_semantics = [#tpu.dimension_semantics<parallel>, #tpu.dimension_semantics<arbitrary>], iteration_bounds = array<i64: 2, 1>, scalar_prefetch = 0 : i64, scratch_operands = 1 : i64, tpu.core_type = #tpu.core_type<tc>, window_params = [{transform_indices = @transform_0, window_bounds = array<i64: 8, 128>}, {transform_indices = @transform_1, window_bounds = array<i64: 8, 128>}, {transform_indices = @transform_2, window_bounds = array<i64: 1, 8, 1>}]} {
    %c0_i32 = arith.constant 0 : i32
    %0 = arith.cmpi eq, %arg1, %c0_i32 : i32
    %1 = arith.extui %0 : i1 to i32
    %c0_i32_0 = arith.constant 0 : i32
    %2 = arith.cmpi ne, %1, %c0_i32_0 : i32
    scf.if %2 {
      %cst_57 = arith.constant 0.000000e+00 : f32
      %95 = vector.broadcast %cst_57 : f32 to vector<8x8x128xf32>
      %c0_58 = arith.constant 0 : index
      %c0_59 = arith.constant 0 : index
      %c0_60 = arith.constant 0 : index
      %96 = vector.load %arg5[%c0_58, %c0_59, %c0_60] : memref<8x8x128xf32, #tpu.memory_space<vmem>>, vector<8x8x128xf32>
      tpu.vector_store %arg5[%c0_58, %c0_59, %c0_60], %95 {strides = array<i32>} : memref<8x8x128xf32, #tpu.memory_space<vmem>>, vector<8x8x128xf32>,
    } else {
    }
    %c0 = arith.constant 0 : index
    %c0_1 = arith.constant 0 : index
    %3 = vector.load %arg2[%c0, %c0_1] : memref<8x128xi32, #tpu.memory_space<vmem>>, vector<8x128xi32>
    %c0_2 = arith.constant 0 : index
    %c0_3 = arith.constant 0 : index
    %4 = vector.load %arg3[%c0_2, %c0_3] : memref<8x128xf32, #tpu.memory_space<vmem>>, vector<8x128xf32>
    %c1_i32 = arith.constant 1 : i32
    %5 = arith.muli %arg0, %c1_i32 : i32
    %6 = arith.addi %5, %arg1 : i32
    %c128_i32 = arith.constant 128 : i32
    %7 = arith.muli %6, %c128_i32 : i32
    %8 = tpu.iota {dimensions = array<i32: 1>} : vector<8x128xi32>
    %9 = vector.broadcast %7 : i32 to vector<8x128xi32>
    %10 = arith.addi %9, %8 : vector<8x128xi32>
    %c250_i32 = arith.constant 250 : i32
    %11 = vector.broadcast %c250_i32 : i32 to vector<8x128xi32>
    %12 = arith.cmpi slt, %10, %11 : vector<8x128xi32>
    %c-1_i32 = arith.constant -1 : i32
    %13 = vector.broadcast %c-1_i32 : i32 to vector<8x128xi32>
    %14 = arith.cmpi ne, %3, %13 : vector<8x128xi32>
    %15 = arith.andi %12, %14 : vector<8x128xi1>
    %c0_i32_4 = arith.constant 0 : i32
    %16 = vector.broadcast %c0_i32_4 : i32 to vector<8x128xi32>
    %17 = arith.cmpi sgt, %3, %16 : vector<8x128xi32>
    %18 = arith.andi %15, %17 : vector<8x128xi1>
    %19 = arith.extui %18 : vector<8x128xi1> to vector<8x128xi32>
    %20 = arith.sitofp %19 : vector<8x128xi32> to vector<8x128xf32>
    %c0_i32_5 = arith.constant 0 : i32
    %21 = vector.broadcast %c0_i32_5 : i32 to vector<8x128xi32>
    %22 = arith.cmpi eq, %3, %21 : vector<8x128xi32>
    %23 = arith.andi %15, %22 : vector<8x128xi1>
    %24 = arith.extui %23 : vector<8x128xi1> to vector<8x128xi32>
    %25 = arith.sitofp %24 : vector<8x128xi32> to vector<8x128xf32>
    %c6 = arith.constant 6 : index
    %c0_6 = arith.constant 0 : index
    %c0_7 = arith.constant 0 : index
    %26 = vector.load %arg5[%c6, %c0_6, %c0_7] : memref<8x8x128xf32, #tpu.memory_space<vmem>>, vector<1x8x128xf32>
    %27 = vector.shape_cast %26 : vector<1x8x128xf32> to vector<8x128xf32>
    %28 = arith.addf %27, %20 : vector<8x128xf32>
    %c6_8 = arith.constant 6 : index
    %c0_9 = arith.constant 0 : index
    %c0_10 = arith.constant 0 : index
    %29 = vector.load %arg5[%c6_8, %c0_9, %c0_10] : memref<8x8x128xf32, #tpu.memory_space<vmem>>, vector<1x8x128xf32>
    %30 = vector.shape_cast %29 : vector<1x8x128xf32> to vector<8x128xf32>
    %31 = vector.shape_cast %28 : vector<8x128xf32> to vector<1x8x128xf32>
    tpu.vector_store %arg5[%c6_8, %c0_9, %c0_10], %31 {strides = array<i32>} : memref<8x8x128xf32, #tpu.memory_space<vmem>>, vector<1x8x128xf32>,
    %c7 = arith.constant 7 : index
    %c0_11 = arith.constant 0 : index
    %c0_12 = arith.constant 0 : index
    %32 = vector.load %arg5[%c7, %c0_11, %c0_12] : memref<8x8x128xf32, #tpu.memory_space<vmem>>, vector<1x8x128xf32>
    %33 = vector.shape_cast %32 : vector<1x8x128xf32> to vector<8x128xf32>
    %34 = arith.addf %33, %25 : vector<8x128xf32>
    %c7_13 = arith.constant 7 : index
    %c0_14 = arith.constant 0 : index
    %c0_15 = arith.constant 0 : index
    %35 = vector.load %arg5[%c7_13, %c0_14, %c0_15] : memref<8x8x128xf32, #tpu.memory_space<vmem>>, vector<1x8x128xf32>
    %36 = vector.shape_cast %35 : vector<1x8x128xf32> to vector<8x128xf32>
    %37 = vector.shape_cast %34 : vector<8x128xf32> to vector<1x8x128xf32>
    tpu.vector_store %arg5[%c7_13, %c0_14, %c0_15], %37 {strides = array<i32>} : memref<8x8x128xf32, #tpu.memory_space<vmem>>, vector<1x8x128xf32>,
    %cst = arith.constant -0.847297847 : f32
    %38 = vector.broadcast %cst : f32 to vector<8x128xf32>
    %39 = arith.cmpf ogt, %4, %38 : vector<8x128xf32>
    %c0_16 = arith.constant 0 : index
    %c0_17 = arith.constant 0 : index
    %c0_18 = arith.constant 0 : index
    %40 = vector.load %arg5[%c0_16, %c0_17, %c0_18] : memref<8x8x128xf32, #tpu.memory_space<vmem>>, vector<1x8x128xf32>
    %41 = vector.shape_cast %40 : vector<1x8x128xf32> to vector<8x128xf32>
    %cst_19 = arith.constant 0.000000e+00 : f32
    %42 = vector.broadcast %cst_19 : f32 to vector<8x128xf32>
    %43 = arith.select %39, %20, %42 : vector<8x128xi1>, vector<8x128xf32>
    %44 = arith.addf %41, %43 : vector<8x128xf32>
    %c0_20 = arith.constant 0 : index
    %c0_21 = arith.constant 0 : index
    %c0_22 = arith.constant 0 : index
    %45 = vector.load %arg5[%c0_20, %c0_21, %c0_22] : memref<8x8x128xf32, #tpu.memory_space<vmem>>, vector<1x8x128xf32>
    %46 = vector.shape_cast %45 : vector<1x8x128xf32> to vector<8x128xf32>
    %47 = vector.shape_cast %44 : vector<8x128xf32> to vector<1x8x128xf32>
    tpu.vector_store %arg5[%c0_20, %c0_21, %c0_22], %47 {strides = array<i32>} : memref<8x8x128xf32, #tpu.memory_space<vmem>>, vector<1x8x128xf32>,
    %c3 = arith.constant 3 : index
    %c0_23 = arith.constant 0 : index
    %c0_24 = arith.constant 0 : index
    %48 = vector.load %arg5[%c3, %c0_23, %c0_24] : memref<8x8x128xf32, #tpu.memory_space<vmem>>, vector<1x8x128xf32>
    %49 = vector.shape_cast %48 : vector<1x8x128xf32> to vector<8x128xf32>
    %cst_25 = arith.constant 0.000000e+00 : f32
    %50 = vector.broadcast %cst_25 : f32 to vector<8x128xf32>
    %51 = arith.select %39, %25, %50 : vector<8x128xi1>, vector<8x128xf32>
    %52 = arith.addf %49, %51 : vector<8x128xf32>
    %c3_26 = arith.constant 3 : index
    %c0_27 = arith.constant 0 : index
    %c0_28 = arith.constant 0 : index
    %53 = vector.load %arg5[%c3_26, %c0_27, %c0_28] : memref<8x8x128xf32, #tpu.memory_space<vmem>>, vector<1x8x128xf32>
    %54 = vector.shape_cast %53 : vector<1x8x128xf32> to vector<8x128xf32>
    %55 = vector.shape_cast %52 : vector<8x128xf32> to vector<1x8x128xf32>
    tpu.vector_store %arg5[%c3_26, %c0_27, %c0_28], %55 {strides = array<i32>} : memref<8x8x128xf32, #tpu.memory_space<vmem>>, vector<1x8x128xf32>,
    %cst_29 = arith.constant 0.000000e+00 : f32
    %56 = vector.broadcast %cst_29 : f32 to vector<8x128xf32>
    %57 = arith.cmpf ogt, %4, %56 : vector<8x128xf32>
    %c1 = arith.constant 1 : index
    %c0_30 = arith.constant 0 : index
    %c0_31 = arith.constant 0 : index
    %58 = vector.load %arg5[%c1, %c0_30, %c0_31] : memref<8x8x128xf32, #tpu.memory_space<vmem>>, vector<1x8x128xf32>
    %59 = vector.shape_cast %58 : vector<1x8x128xf32> to vector<8x128xf32>
    %cst_32 = arith.constant 0.000000e+00 : f32
    %60 = vector.broadcast %cst_32 : f32 to vector<8x128xf32>
    %61 = arith.select %57, %20, %60 : vector<8x128xi1>, vector<8x128xf32>
    %62 = arith.addf %59, %61 : vector<8x128xf32>
    %c1_33 = arith.constant 1 : index
    %c0_34 = arith.constant 0 : index
    %c0_35 = arith.constant 0 : index
    %63 = vector.load %arg5[%c1_33, %c0_34, %c0_35] : memref<8x8x128xf32, #tpu.memory_space<vmem>>, vector<1x8x128xf32>
    %64 = vector.shape_cast %63 : vector<1x8x128xf32> to vector<8x128xf32>
    %65 = vector.shape_cast %62 : vector<8x128xf32> to vector<1x8x128xf32>
    tpu.vector_store %arg5[%c1_33, %c0_34, %c0_35], %65 {strides = array<i32>} : memref<8x8x128xf32, #tpu.memory_space<vmem>>, vector<1x8x128xf32>,
    %c4 = arith.constant 4 : index
    %c0_36 = arith.constant 0 : index
    %c0_37 = arith.constant 0 : index
    %66 = vector.load %arg5[%c4, %c0_36, %c0_37] : memref<8x8x128xf32, #tpu.memory_space<vmem>>, vector<1x8x128xf32>
    %67 = vector.shape_cast %66 : vector<1x8x128xf32> to vector<8x128xf32>
    %cst_38 = arith.constant 0.000000e+00 : f32
    %68 = vector.broadcast %cst_38 : f32 to vector<8x128xf32>
    %69 = arith.select %57, %25, %68 : vector<8x128xi1>, vector<8x128xf32>
    %70 = arith.addf %67, %69 : vector<8x128xf32>
    %c4_39 = arith.constant 4 : index
    %c0_40 = arith.constant 0 : index
    %c0_41 = arith.constant 0 : index
    %71 = vector.load %arg5[%c4_39, %c0_40, %c0_41] : memref<8x8x128xf32, #tpu.memory_space<vmem>>, vector<1x8x128xf32>
    %72 = vector.shape_cast %71 : vector<1x8x128xf32> to vector<8x128xf32>
    %73 = vector.shape_cast %70 : vector<8x128xf32> to vector<1x8x128xf32>
    tpu.vector_store %arg5[%c4_39, %c0_40, %c0_41], %73 {strides = array<i32>} : memref<8x8x128xf32, #tpu.memory_space<vmem>>, vector<1x8x128xf32>,
    %cst_42 = arith.constant 0.847297847 : f32
    %74 = vector.broadcast %cst_42 : f32 to vector<8x128xf32>
    %75 = arith.cmpf ogt, %4, %74 : vector<8x128xf32>
    %c2 = arith.constant 2 : index
    %c0_43 = arith.constant 0 : index
    %c0_44 = arith.constant 0 : index
    %76 = vector.load %arg5[%c2, %c0_43, %c0_44] : memref<8x8x128xf32, #tpu.memory_space<vmem>>, vector<1x8x128xf32>
    %77 = vector.shape_cast %76 : vector<1x8x128xf32> to vector<8x128xf32>
    %cst_45 = arith.constant 0.000000e+00 : f32
    %78 = vector.broadcast %cst_45 : f32 to vector<8x128xf32>
    %79 = arith.select %75, %20, %78 : vector<8x128xi1>, vector<8x128xf32>
    %80 = arith.addf %77, %79 : vector<8x128xf32>
    %c2_46 = arith.constant 2 : index
    %c0_47 = arith.constant 0 : index
    %c0_48 = arith.constant 0 : index
    %81 = vector.load %arg5[%c2_46, %c0_47, %c0_48] : memref<8x8x128xf32, #tpu.memory_space<vmem>>, vector<1x8x128xf32>
    %82 = vector.shape_cast %81 : vector<1x8x128xf32> to vector<8x128xf32>
    %83 = vector.shape_cast %80 : vector<8x128xf32> to vector<1x8x128xf32>
    tpu.vector_store %arg5[%c2_46, %c0_47, %c0_48], %83 {strides = array<i32>} : memref<8x8x128xf32, #tpu.memory_space<vmem>>, vector<1x8x128xf32>,
    %c5 = arith.constant 5 : index
    %c0_49 = arith.constant 0 : index
    %c0_50 = arith.constant 0 : index
    %84 = vector.load %arg5[%c5, %c0_49, %c0_50] : memref<8x8x128xf32, #tpu.memory_space<vmem>>, vector<1x8x128xf32>
    %85 = vector.shape_cast %84 : vector<1x8x128xf32> to vector<8x128xf32>
    %cst_51 = arith.constant 0.000000e+00 : f32
    %86 = vector.broadcast %cst_51 : f32 to vector<8x128xf32>
    %87 = arith.select %75, %25, %86 : vector<8x128xi1>, vector<8x128xf32>
    %88 = arith.addf %85, %87 : vector<8x128xf32>
    %c5_52 = arith.constant 5 : index
    %c0_53 = arith.constant 0 : index
    %c0_54 = arith.constant 0 : index
    %89 = vector.load %arg5[%c5_52, %c0_53, %c0_54] : memref<8x8x128xf32, #tpu.memory_space<vmem>>, vector<1x8x128xf32>
    %90 = vector.shape_cast %89 : vector<1x8x128xf32> to vector<8x128xf32>
    %91 = vector.shape_cast %88 : vector<8x128xf32> to vector<1x8x128xf32>
    tpu.vector_store %arg5[%c5_52, %c0_53, %c0_54], %91 {strides = array<i32>} : memref<8x8x128xf32, #tpu.memory_space<vmem>>, vector<1x8x128xf32>,
    %c0_i32_55 = arith.constant 0 : i32
    %92 = arith.cmpi eq, %arg1, %c0_i32_55 : i32
    %93 = arith.extui %92 : i1 to i32
    %c0_i32_56 = arith.constant 0 : i32
    %94 = arith.cmpi ne, %93, %c0_i32_56 : i32
    scf.if %94 {
      %c0_57 = arith.constant 0 : index
      %c0_58 = arith.constant 0 : index
      %c0_59 = arith.constant 0 : index
      %95 = vector.load %arg5[%c0_57, %c0_58, %c0_59] : memref<8x8x128xf32, #tpu.memory_space<vmem>>, vector<8x8x128xf32>
      %cst_60 = arith.constant dense<0.000000e+00> : vector<8x8xf32>
      %96 = vector.multi_reduction <add>, %95, %cst_60 [2] : vector<8x8x128xf32> to vector<8x8xf32>
      %cst_61 = arith.constant dense<0.000000e+00> : vector<8xf32>
      %97 = vector.multi_reduction <add>, %96, %cst_61 [1] : vector<8x8xf32> to vector<8xf32>
      %98 = vector.shape_cast %97 : vector<8xf32> to vector<8x1xf32>
      %99 = vector.shape_cast %98 : vector<8x1xf32> to vector<1x8x1xf32>
      %c0_62 = arith.constant 0 : index
      %c0_63 = arith.constant 0 : index
      %c0_64 = arith.constant 0 : index
      %100 = vector.load %arg4[%c0_62, %c0_63, %c0_64] : memref<1x8x1xf32, #tpu.memory_space<vmem>>, vector<1x8x1xf32>
      tpu.vector_store %arg4[%c0_62, %c0_63, %c0_64], %99 {strides = array<i32>} : memref<1x8x1xf32, #tpu.memory_space<vmem>>, vector<1x8x1xf32>,
    } else {
    }
    return
  }
  func.func @transform_0(%arg0: i32, %arg1: i32) -> (i32, i32) {
    %c1_i32 = arith.constant 1 : i32
    %0 = arith.muli %arg0, %c1_i32 : i32
    %1 = arith.addi %0, %arg1 : i32
    %c1_i32_0 = arith.constant 1 : i32
    %2 = arith.minsi %1, %c1_i32_0 : i32
    %c0_i32 = arith.constant 0 : i32
    %c0_i32_1 = arith.constant 0 : i32
    return %c0_i32, %2 : i32, i32
  }
  func.func @transform_1(%arg0: i32, %arg1: i32) -> (i32, i32) {
    %c1_i32 = arith.constant 1 : i32
    %0 = arith.muli %arg0, %c1_i32 : i32
    %1 = arith.addi %0, %arg1 : i32
    %c1_i32_0 = arith.constant 1 : i32
    %2 = arith.minsi %1, %c1_i32_0 : i32
    %c0_i32 = arith.constant 0 : i32
    %c0_i32_1 = arith.constant 0 : i32
    return %c0_i32, %2 : i32, i32
  }
  func.func @transform_2(%arg0: i32, %arg1: i32) -> (i32, i32, i32) {
    %c0_i32 = arith.constant 0 : i32
    %c0_i32_0 = arith.constant 0 : i32
    %c0_i32_1 = arith.constant 0 : i32
    return %arg0, %c0_i32, %c0_i32_0 : i32, i32, i32
  }
}

</mosaic_0001>

<bundles_post_ra>
// kernel: tpu_custom_call.1
= control target key start
LH: loop header
LB: loop body
LE: loop exit
PB: predicated region body
PF: predicated region fallthrough
CT: control target
= control target key end

     0   :  { %7 = vsyncpa [#allocation4], 0  ;;  %s823_s0 = inlined_call_operand.hbm [shape: s32[8,250], index: 0, kind: input, shape index: {}]   ;;  %s824_s1 = inlined_call_operand.hbm [shape: f32[8,250], index: 1, kind: input, shape index: {}]   ;;  %s825_s2 = inlined_call_operand.vmem [shape: f32[2,8,1], index: 2, kind: output, shape index: {}]  }
   0x1   :  { %9 = vsyncpa [#allocation4 + $0x1], 0 }
   0x2   :  { %10 = vsyncpa [#allocation6], 0 }
   0x3   :  { %12 = vsyncpa [#allocation6 + $0x1], 0  ;;  %s695_s9 = smov 0   ;;  %s697_s10 = smov 0  }
   0x4   :  { %s699_s11 = smov 0   ;;  %s701_s12 = smov 0  }
   0x5   :  { %s703_s13 = smov 0   ;;  %s705_s14 = smov 0  }
   0x6 LB: > { %s487_s15 = sadd.s32 4294967295, %s675_s14   ;;  %s30_s16 = sadd.s32 1, %s671_s13  ;;  %s675_s14 = sphi %s705_s14, %s18_s14   ;;  %s671_s13 = sphi %s703_s13, %s833_s13   ;;  %s667_s12 = sphi %s701_s12, %s832_s12   ;;  %s663_s11 = sphi %s699_s11, %s831_s11   ;;  %s659_s10 = sphi %s697_s10, %s830_s10   ;;  %s655_s9 = sphi %s695_s9, %s829_s9  }
   0x7   : > { %p32_p0 = scmp.ge.s32.totalorder %s30_s16, 2  ;;  %p35_p1 = scmp.lt.s32.totalorder %s671_s13, 1 }
   0x8   : > { %s43_s17 = sadd.s32 1, %s663_s11  ;;  %p50_p2 = scmp.ne.s32.totalorder %s663_s11, %s659_s10 }
   0x9   : > { %s835_s16 = smov (%p32_p0, %s30_s16), 0  ;;  %p51_p4 = scmp.eq.s32.totalorder %s675_s14, 0 }
   0xa   : > { %s732_s18 = scalar_select %p35_p1, %s671_s13, 1 }
   0xb   : > { %p38_p3 = scmp.lt.s32.totalorder %s835_s16, 1  ;;  %p56_p5 = scmp.ne.s32.totalorder %s659_s10, %s655_s9 }
   0xc   : > { %p57_p6 = scmp.eq.s32.totalorder %s487_s15, 0  ;;  %p52_p7 = por %p51_p4, %p50_p2 }
   0xd   : > { %s39_s19 = scalar_select %p38_p3, %s835_s16, 1 }
   0xe   : > { %p738_p8 = por %p57_p6, %p56_p5  ;;  %p515_p10 = scmp.lt.s32.totalorder %s675_s14, 2 }
   0xf   : > { %s40_s21 = ssub.s32 %s732_s18, %s39_s19  ;;  %s745_s22 = sand.u32 1, %s663_s11  }
  0x10   : > { %p41_p9 = scmp.eq.s32.totalorder %s40_s21, 0  ;;  %s492_s23 = sshll.u32 %s732_s18, 7 }
  0x11   : > { %s491_s25 = sshll.u32 %s745_s22, 3  ;;  %s150_s28 = scalar_lea.hbm %s823_s0, %s492_s23 }
  0x12   : > { %s749_s24 = scalar_select %p41_p9, %s663_s11, %s43_s17  }
  0x13   : > { %s142_s29 = scalar_lea.vmem [#allocation3], %s491_s25  ;;  %p755_p11 = pnand %p515_p10, %p52_p7 }
  0x14   : > { %s152_s30 = sshll.u32 %s142_s29, 4  ;;  %p495_p12 = scmp.ge.s32.totalorder %s675_s14, 1  ;;  %s153_s30 = int_to_ptr.vmem [resolvable:$true] %s152_s30 }
  0x15   : > { %p178_p13 = scmp.lt.s32.totalorder %s675_s14, 3  ;;  %s139_s4 = scalar_lea.sflag [#allocation4], %s745_s22 }
  0x16   : > { %p567_p0 = pneg %p755_p11  ;;  %s578_s5 = scalar_lea.vmem %s153_s30, 128 }
  0x17   : > { %p579_p1 = scmp.ne.s32.totalorder %s153_s30, %s578_s5  ;;  %s677_s6 = smov [#allocation3]  }
  0x18   : > { %s583_s7 = sshll.u32 %s677_s6, 4  ;;  %s584_s7 = int_to_ptr.vmem [resolvable:$false] %s583_s7 }
  0x19   : > { %p581_p2 = pnand %p579_p1, %p567_p0  ;;  %s585_s8 = scalar_lea.vmem %s584_s7, 256 }
  0x1a   : > { %p586_p4 = scmp.lt.s32.totalorder %s153_s30, %s584_s7  ;;  %p587_p5 = scmp.lt.s32.totalorder %s585_s8, %s578_s5 }
  0x1b   : > { %p582_p3 = pneg %p581_p2 }
  0x1c   : > { %p588_p6 = por %p587_p5, %p586_p4 }
  0x1e   : > { %p589_p7 = pnand %p588_p6, %p582_p3 }
  0x20   : > { %592 = shalt.err (!%p589_p7)
}
  0x21   : > { %511 = dma.hbm_to_vmem [thread:$0]  (!%p755_p11), %s150_s28, 128, %s153_s30, %s139_s4  }
  0x22   : > { %p773_p9 = pnand %p495_p12, %p178_p13  ;;  %s171_s18 = scalar_lea.hbm %s824_s1, %s492_s23 }
  0x23   : > { %s163_s19 = scalar_lea.vmem [#allocation5], %s491_s25  ;;  %s160_s26 = scalar_lea.sflag [#allocation6], %s745_s22 }
  0x24   : > { %s173_s21 = sshll.u32 %s163_s19, 4  ;;  %s678_s28 = smov [#allocation5]   ;;  %s174_s21 = int_to_ptr.vmem [resolvable:$true] %s173_s21 }
  0x25   : > { %s606_s27 = scalar_lea.vmem %s174_s21, 128  ;;  %s611_s29 = sshll.u32 %s678_s28, 4  ;;  %s612_s29 = int_to_ptr.vmem [resolvable:$false] %s611_s29 }
  0x26   : > { %p607_p10 = scmp.ne.s32.totalorder %s174_s21, %s606_s27  ;;  %s613_s30 = scalar_lea.vmem %s612_s29, 256 }
  0x27   : > { %p614_p12 = scmp.lt.s32.totalorder %s174_s21, %s612_s29  ;;  %p615_p13 = scmp.lt.s32.totalorder %s613_s30, %s606_s27 }
  0x28   : > { %p609_p1 = pnand %p607_p10, %p567_p0 }
  0x29   : > { %p616_p3 = por %p615_p13, %p614_p12 }
  0x2a   : > { %p610_p2 = pneg %p609_p1 }
  0x2c   : > { %p617_p4 = pnand %p616_p3, %p610_p2 }
  0x2e   : > { %620 = shalt.err (!%p617_p4)
}
  0x2f   : > { %514 = dma.hbm_to_vmem [thread:$0]  (!%p755_p11), %s171_s18, 128, %s174_s21, %s160_s26  }
  0x30   : > { %182 = sbr.rel (%p773_p9) target bundleno = 361 (0x169), region = 28  ;;  %s184_s22 = sand.u32 (!%p773_p9), 1, %s659_s10  }
  0x31   : > { %s496_s23 = sshll.u32 (!%p773_p9), %s184_s22, 3  ;;  %s185_s25 = scalar_lea.sflag (!%p773_p9), [#allocation4], %s184_s22 }
  0x32   : > { %s188_s4 = scalar_lea.vmem (!%p773_p9), [#allocation3], %s496_s23 }
  0x35   : > { %646 = dma.done.wait (%p738_p8), %s185_s25, 128  }
  0x36   : > { %648 = vsyncadd (%p738_p8), %s185_s25, 4294967168  ;;  %s194_s5 = scalar_lea.sflag [#allocation6], %s184_s22  ;;  %s197_s6 = scalar_lea.vmem [#allocation5], %s496_s23 }
  0x37   : > { %650 = dma.done.wait (%p738_p8), %s194_s5, 128  }
  0x38   : > { %652 = vsyncadd (%p738_p8), %s194_s5, 4294967168  ;;  %s499_s3 = sshll.u32 %s667_s12, 7  ;;  %v248_v0 = vlaneseq  ;;  %v244_v6 = vld [vmem:[%s188_s4] sm:$0xff]  ;;  %v245_v7 = vld [vmem:[%s197_s6] sm:$0xff]  ;;  %v679_v8 = vmov 0.0   ;;  %vm370_vm10 = vcmask 1041409  }
  0x39   : > { %v250_v1 = vstv %s499_s3  ;;  %vm253_vm1 = vcmp.ne.s32.totalorder %v244_v6, 4294967295  ;;  %vm255_vm2 = vcmp.gt.s32.totalorder %v244_v6, 0  ;;  %vm271_vm4 = vcmp.gt.f32.partialorder %v245_v7, -0.84729785  ;;  %p228_p8 = scmp.lt.s32.totalorder %s667_s12, 1 }
  0x3a   : > { %v249_v2 = vand.u32 127, %v248_v0  ;;  %v339_v3 = vshrl.u32 %v248_v0, 7  ;;  %vm292_vm5 = vcmp.gt.f32.partialorder %v245_v7, 0.84729785  ;;  %vm259_vm6 = vcmp.eq.s32.totalorder %v244_v6, 0 }
  0x3b   : > { %vm281_vm8 = vcmp.gt.f32.partialorder %v245_v7, 0.0  ;;  %vm372_vm11 = vcmask 1042434   ;;  %vm374_vm12 = vcmask 1043459   ;;  %vm376_vm13 = vcmask 1044484   ;;  %s837_s12 = smov (!%p228_p8, %s667_s12), 1 }
  0x3c   : > { %v251_v4 = vadd.s32 %v250_v1, %v249_v2  ;;  %v340_v5 = vsub.s32 %v249_v2, %v339_v3  ;;  %vm378_vm14 = vcmask 1045509   ;;  %vm380_vm15 = vcmask 1046534   ;;  %s498_s20 = sshll.u32 %s837_s12, 3 }
  0x3d   : > { %s231_s9 = scalar_lea.vmem %s825_s2, %s498_s20 }
  0x3e   : > { %vm252_vm0 = vcmp.lt.s32.totalorder %v251_v4, 250 }
  0x3f   : > { %vm254_vm3 = vmand %vm252_vm0, %vm253_vm1  ;;  %vm382_vm0 = vcmask 1047559   ;;  %vm385_vm1 = vcmask 64512  }
  0x40   : > { %vm256_vm7 = vmand %vm254_vm3, %vm255_vm2  ;;  %vm389_vm2 = vcmask 7168  }
  0x41   : > { %v500_v9 = vsel %vm256_vm7, 1.0, %v679_v8  ;;  %vm260_vm9 = vmand %vm254_vm3, %vm259_vm6 }
  0x42   : > { %v273_v10 = vsel %vm271_vm4, %v500_v9, 0.0  ;;  %v295_v11 = vsel %vm292_vm5, %v500_v9, 0.0  ;;  %v501_v12 = vsel %vm260_vm9, 1.0, %v679_v8  ;;  %v284_v13 = vsel %vm281_vm8, %v500_v9, 0.0 }
  0x43   : > { %314 = vadd.xlane.f32.xlu0 %v273_v10  ;;  %318 = vadd.xlane.f32.xlu1 %v295_v11  ;;  %v278_v14 = vsel %vm271_vm4, %v501_v12, 0.0  ;;  %v289_v15 = vsel %vm281_vm8, %v501_v12, 0.0  ;;  %v300_v16 = vsel %vm292_vm5, %v501_v12, 0.0 }
  0x47   : > { %316 = vadd.xlane.f32.xlu0 %v284_v13  ;;  %320 = vadd.xlane.f32.xlu1 %v278_v14 }
  0x4b   : > { %322 = vadd.xlane.f32.xlu0 %v289_v15  ;;  %324 = vadd.xlane.f32.xlu1 %v300_v16 }
  0x4f   : > { %326 = vadd.xlane.f32.xlu0 %v500_v9  ;;  %328 = vadd.xlane.f32.xlu1 %v501_v12 }
  0xcc   : > { %v315_v17 = vpop.xlane.xlu0 %314  ;;  %v319_v18 = vpop.xlane.xlu1 %318 }
  0xcd   : > { %v341_v21 = vrot.slane %v315_v17, %v340_v5  ;;  %v349_v24 = vrot.slane %v319_v18, %v340_v5 }
  0xd0   : > { %v317_v19 = vpop.xlane.xlu0 %316  ;;  %v321_v20 = vpop.xlane.xlu1 %320 }
  0xd1   : > { %v345_v22 = vrot.slane %v317_v19, %v340_v5  ;;  %v353_v23 = vrot.slane %v321_v20, %v340_v5 }
  0xd3   : > { %v371_v25 = vsel %vm370_vm10, %v345_v22, %v341_v21 }
  0xd4   : > { %v373_v26 = vsel %vm372_vm11, %v349_v24, %v371_v25  ;;  %v323_v27 = vpop.xlane.xlu0 %322  ;;  %v325_v28 = vpop.xlane.xlu1 %324 }
  0xd5   : > { %v375_v29 = vsel %vm374_vm12, %v353_v23, %v373_v26  ;;  %v357_v30 = vrot.slane %v323_v27, %v340_v5  ;;  %v361_v31 = vrot.slane %v325_v28, %v340_v5 }
  0xd7   : > { %v377_v32 = vsel %vm376_vm13, %v357_v30, %v375_v29 }
  0xd8   : > { %v327_v33 = vpop.xlane.xlu0 %326  ;;  %v329_v34 = vpop.xlane.xlu1 %328  ;;  %v379_v37 = vsel %vm378_vm14, %v361_v31, %v377_v32 }
  0xd9   : > { %v365_v35 = vrot.slane %v327_v33, %v340_v5  ;;  %v369_v36 = vrot.slane %v329_v34, %v340_v5 }
  0xdb   : > { %v381_v38 = vsel %vm380_vm15, %v365_v35, %v379_v37 }
  0xdc   : > { %v383_v39 = vsel %vm382_vm0, %v369_v36, %v381_v38 }
  0xdd   : > { %v386_v40 = vsel %vm385_vm1, %v383_v39, 0.0 }
  0xde   : > { %387 = vadd.xlane.f32.xlu0 %v386_v40 }
 0x167   : > { %v388_v41 = vpop.xlane.xlu0 %387 }
 0x168   : > { %390 = vst.msk [vmem:[%s231_s9] sm:$0xff] %vm389_vm2, %v388_v41 }
 0x169 PF: > { %s18_s14 = sadd.s32 1, %s675_s14   ;;  %s829_s9 = smov %s659_s10 }
 0x16a   : > { %p15_p11 = scmp.ge.s32.totalorder %s18_s14, 4   ;;  %s830_s10 = smov %s663_s11 }
 0x16b   : > { %s831_s11 = smov %s749_s24  ;;  %s832_s12 = smov %s671_s13 }
 0x16c   : > { %s833_s13 = smov %s835_s16  ;;  %17 = sbr.rel (!%p15_p11) target bundleno = 6 (0x6), region = 96 }
 0x171   :  { %410 = vsyncpa [#allocation4], 1 }
 0x172   :  { %412 = vsyncpa [#allocation4 + $0x1], 1 }
 0x173   :  { %413 = vsyncpa [#allocation6], 1 }
 0x174   :  { %415 = vsyncpa [#allocation6 + $0x1], 1 }

</bundles_post_ra>
